<compile_context>
chip_gen: v6e
topology: v6e:2x2x1
jax: 0.10.0
libtpu: 0.0.40
codegen_flags: <defaults>
</compile_context>

<pallas_src>
import functools
import math

import jax
import jax.numpy as jnp
from jax import lax
from jax.experimental import pallas as pl
from jax.experimental.pallas import tpu as pltpu

_LANE = 128
_NEG_F32 = float(jnp.finfo(jnp.float32).min)
_TEMP_CAP = 4 * 1024 * 1024  # soft cap on the per-tile f32 score temporary


def _round_up(x, m):
    return ((x + m - 1) // m) * m


def _vmem_budget():
    """(plan_budget_bytes, vmem_limit_bytes), generation aware."""
    cap = 64 * 1024 * 1024  # conservative (v7x-sized) fallback
    try:
        cap = int(pltpu.get_tpu_info().vmem_capacity_bytes)
    except Exception:
        pass
    if cap <= 80 * 1024 * 1024:       # v7x-class: 64 MiB per TensorCore
        return 44 * 1024 * 1024, 58 * 1024 * 1024
    return 100 * 1024 * 1024, 116 * 1024 * 1024   # v5e / v6e: 128 MiB


def _plan_tiles(lq, lk_pad, d, qk_bytes, mask_bytes, out_bytes, budget,
                fixed_tm=None):
    """Return (tm, tk). tk == lk_pad means the resident-K single-block path.

    Returns None when `fixed_tm` is given and nothing fits (caller falls back).
    The accounting includes the in-kernel f32 score/exp temporaries and counts
    the resident K block once (it is single-buffered).
    """
    def need_single(tm):
        k_b = lk_pad * d * qk_bytes               # resident K: single buffer
        q_b = 2 * tm * d * qk_bytes
        o_b = 2 * tm * lk_pad * out_bytes
        m_b = 2 * tm * lk_pad * mask_bytes
        tmp = 2 * tm * lk_pad * 4                 # f32 scores + exp temporaries
        return k_b + q_b + o_b + m_b + tmp

    def need_online(tm, tk):
        k_b = 2 * tk * d * qk_bytes
        q_b = 2 * tm * d * qk_bytes
        o_b = 2 * tm * lk_pad * out_bytes
        m_b = 2 * tm * tk * mask_bytes
        acc = tm * lk_pad * 4                     # running accumulator scratch
        tmp = 2 * tm * tk * 4
        return k_b + q_b + o_b + m_b + acc + tmp

    if fixed_tm is not None:
        tms = [fixed_tm]
    else:
        # Split the query axis into >=2 tiles when possible so both v7x
        # TensorCores get work via dimension_semantics=("parallel", ...).
        tm_top = lq if lq < 16 else min(lq, _round_up(-(-lq // 2), 16))
        tms = [tm_top] + [t for t in (512, 256, 128, 64, 32) if t < tm_top]

    fitting = [tm for tm in tms if need_single(tm) <= budget]
    for tm in fitting:                            # largest first
        if tm * lk_pad * 4 <= _TEMP_CAP:
            return tm, lk_pad
    if fitting:                                   # all spill-heavy: least spill
        return fitting[-1], lk_pad

    # Key-axis online-softmax path for large Lk.
    tks = [t for t in (2048, 1024, 512, 256, 128)
           if t < lk_pad and lk_pad % t == 0]
    if fixed_tm is not None:
        online_tms = [fixed_tm]
    else:
        online_tms = ([t for t in (256, 128, 64, 32) if t < lq]
                      or [_round_up(min(lq, 32), 8)])
    for tm in online_tms:
        for tk in tks:
            if need_online(tm, tk) <= budget and tm * tk * 4 <= _TEMP_CAP:
                return tm, tk
    if fixed_tm is not None:
        return None
    # TODO(synk): fully blocked two-pass softmax for extreme Lk where even a
    # single (32, lk_pad) output row does not fit VMEM.
    return 32, (128 if lk_pad > 128 else lk_pad)


def _scores(q_ref, k_ref, inv_temperature, mxu_bf16):
    """(tm, tk) f32 scores; temperature folded into q in f32."""
    qs = q_ref[...].astype(jnp.float32) * jnp.float32(inv_temperature)
    kk = k_ref[...]
    if mxu_bf16:
        qs = qs.astype(jnp.bfloat16)
        kk = kk.astype(jnp.bfloat16)
    else:
        kk = kk.astype(jnp.float32)
    # Contract D against D directly (trans_b form) -> no in-kernel transpose.
    return lax.dot_general(
        qs, kk,
        dimension_numbers=(((1,), (1,)), ((), ())),
        preferred_element_type=jnp.float32,
    )


def _sdp_single_kernel(*refs, inv_temperature, lk_valid, lk_pad, has_mask,
                       mxu_bf16):
    if has_mask:
        q_ref, k_ref, mask_ref, o_ref = refs
    else:
        q_ref, k_ref, o_ref = refs

    s = _scores(q_ref, k_ref, inv_temperature, mxu_bf16)
    if has_mask:
        # memory_efficient masked_softmax: masked -> dtype min, then softmax.
        s = jnp.where(mask_ref[...] != 0, s, _NEG_F32)
    if lk_valid != lk_pad:  # static: neutralise lane-padding columns
        col = lax.broadcasted_iota(jnp.int32, s.shape, 1)
        s = jnp.where(col < lk_valid, s, -jnp.inf)

    m = jnp.max(s, axis=-1, keepdims=True)
    e = jnp.exp(s - m)
    inv = pl.reciprocal(jnp.sum(e, axis=-1, keepdims=True), approx=False)
    o_ref[...] = (e * inv).astype(o_ref.dtype)


def _sdp_online_kernel(*refs, inv_temperature, lk_valid, lk_pad, tk, has_mask,
                       mxu_bf16):
    """Online softmax over key tiles; full attention row kept in acc scratch."""
    if has_mask:
        q_ref, k_ref, mask_ref, o_ref, m_sc, l_sc, acc_sc = refs
    else:
        q_ref, k_ref, o_ref, m_sc, l_sc, acc_sc = refs

    j = pl.program_id(1)

    @pl.when(j == 0)
    def _init():
        m_sc[...] = jnp.full(m_sc.shape, -jnp.inf, dtype=m_sc.dtype)
        l_sc[...] = jnp.zeros(l_sc.shape, dtype=l_sc.dtype)
        acc_sc[...] = jnp.zeros(acc_sc.shape, dtype=acc_sc.dtype)

    s = _scores(q_ref, k_ref, inv_temperature, mxu_bf16)       # (tm, tk) f32
    if has_mask:
        s = jnp.where(mask_ref[...] != 0, s, _NEG_F32)
    if lk_valid != lk_pad:
        col = lax.broadcasted_iota(jnp.int32, s.shape, 1) + j * tk
        s = jnp.where(col < lk_valid, s, -jnp.inf)

    m_prev = m_sc[...]
    m_new = jnp.maximum(m_prev, jnp.max(s, axis=-1, keepdims=True))
    alpha = jnp.exp(m_prev - m_new)
    e = jnp.exp(s - m_new)
    l_sc[...] = alpha * l_sc[...] + jnp.sum(e, axis=-1, keepdims=True)
    acc_sc[...] = acc_sc[...] * alpha
    start = pl.multiple_of(j * tk, _LANE)
    acc_sc[:, pl.ds(start, tk)] = e
    m_sc[...] = m_new

    @pl.when(j == pl.num_programs(1) - 1)
    def _finalize():
        inv = pl.reciprocal(l_sc[...], approx=False)
        o_ref[...] = (acc_sc[...] * inv).astype(o_ref.dtype)


def scaled_dot_product(q, k, temperature, mask=None, repeat=False, q_len=0,
                       *, mxu_bf16=False, out_dtype=jnp.float32,
                       block_plan=None):
    """Dense branch of ScaledDotProduct.forward.

    q: [Lq, D], k: [Lk, D], mask: optional [Lq_eff, Lk] (1=keep, 0=mask).
    Returns softmax((q @ k^T) / temperature) of shape [Lq_eff, Lk],
    where Lq_eff = q_len * Lq if repeat else Lq.
    """
    if repeat and mask is None:
        # softmax(tile(scores)) == tile(softmax(scores)): compute once, tile out.
        attn = scaled_dot_product(q, k, temperature, mask=None, repeat=False,
                                  mxu_bf16=mxu_bf16, out_dtype=out_dtype,
                                  block_plan=block_plan)
        return jnp.tile(attn, (q_len, 1))

    lq_orig, d = q.shape
    lk = k.shape[0]
    lk_pad = max(_round_up(lk, _LANE), _LANE)
    lq_eff = q_len * lq_orig if repeat else lq_orig

    budget, vmem_limit = _vmem_budget()
    qk_bytes = 2 if mxu_bf16 else 4
    out_bytes = jnp.dtype(out_dtype).itemsize
    mask_plan_bytes = 1 if mask is not None else 0

    q = q.astype(jnp.bfloat16 if mxu_bf16 else jnp.float32)
    k = k.astype(jnp.bfloat16 if mxu_bf16 else jnp.float32)
    if lk_pad != lk:
        k = jnp.pad(k, ((0, lk_pad - lk), (0, 0)))

    # repeat + mask: keep the original q resident instead of tiling it in HBM.
    repeat_mod = bool(repeat and mask is not None and q_len >= 1
                      and lq_orig % 8 == 0)
    plan = None
    if repeat_mod:
        plan = _plan_tiles(lq_eff, lk_pad, d, qk_bytes, mask_plan_bytes,
                           out_bytes, budget, fixed_tm=lq_orig)
        if plan is None:  # a full-q row block does not fit VMEM
            repeat_mod = False
    if repeat and mask is not None and not repeat_mod:
        # TODO(synk): also dedup the repeated q via a modulo index_map when
        # Lq % 8 != 0 or q is too large to keep resident.
        q = jnp.tile(q, (q_len, 1))

    lq = q.shape[0]  # rows handed to pallas_call
    if repeat_mod:
        tm, tk = plan
    elif block_plan is not None:
        tm, tk = block_plan
    else:
        tm, tk = _plan_tiles(lq, lk_pad, d, qk_bytes, mask_plan_bytes,
                             out_bytes, budget)

    online = tk < lk_pad

    # ---- row padding & grid extents ----------------------------------------
    if repeat_mod:
        n_i = q_len
        out_rows = lq_eff
    else:
        out_rows = _round_up(lq, tm)
        n_i = out_rows // tm
        if out_rows != lq:
            q = jnp.pad(q, ((0, out_rows - lq), (0, 0)))

    # ---- mask prep (narrowest dtype the row tile allows) --------------------
    has_mask = mask is not None
    if has_mask:
        if tm % 32 == 0:
            mdtype = jnp.int8
        elif tm % 16 == 0:
            mdtype = jnp.bfloat16
        else:
            mdtype = jnp.float32
        mask = mask.astype(mdtype)
        if lk_pad != lk:
            mask = jnp.pad(mask, ((0, 0), (0, lk_pad - lk)))
        if mask.shape[0] != out_rows:
            mask = jnp.pad(mask, ((0, out_rows - mask.shape[0]), (0, 0)),
                           constant_values=1)

    static = dict(inv_temperature=float(1.0 / float(temperature)),
                  lk_valid=lk, lk_pad=lk_pad, has_mask=has_mask,
                  mxu_bf16=mxu_bf16)

    if online:
        kernel = functools.partial(_sdp_online_kernel, tk=tk, **static)
        grid = (n_i, lk_pad // tk)
        dims = ("parallel", "arbitrary")
        q_im = (lambda i, j: (0, 0)) if repeat_mod else (lambda i, j: (i, 0))
        k_im = lambda i, j: (j, 0)
        o_im = lambda i, j: (i, 0)
        m_im = lambda i, j: (i, j)
        k_block = (tk, d)
        m_block = (tm, tk)
        scratch = [pltpu.VMEM((tm, 1), jnp.float32),        # running max m
                   pltpu.VMEM((tm, 1), jnp.float32),        # running sum l
                   pltpu.VMEM((tm, lk_pad), jnp.float32)]   # unnormalised row
        k_resident = False
    else:
        kernel = functools.partial(_sdp_single_kernel, **static)
        grid = (n_i,)
        dims = ("parallel",)
        q_im = (lambda i: (0, 0)) if repeat_mod else (lambda i: (i, 0))
        k_im = lambda i: (0, 0)
        o_im = lambda i: (i, 0)
        m_im = lambda i: (i, 0)
        k_block = (lk_pad, d)
        m_block = (tm, lk_pad)
        scratch = []
        k_resident = True

    out_shape = jax.ShapeDtypeStruct((out_rows, lk_pad), out_dtype)
    compiler_params = pltpu.CompilerParams(
        dimension_semantics=dims, vmem_limit_bytes=vmem_limit)

    def _call(use_single_buffer):
        def sb(resident):
            if use_single_buffer and resident:
                # constant index_map -> one buffer is enough; reclaims VMEM
                return dict(pipeline_mode=pl.Buffered(1))
            return {}
        in_specs = [pl.BlockSpec((tm, d), q_im, **sb(repeat_mod)),
                    pl.BlockSpec(k_block, k_im, **sb(k_resident))]
        args = [q, k]
        if has_mask:
            in_specs.append(pl.BlockSpec(m_block, m_im))
            args.append(mask)
        return pl.pallas_call(
            kernel,
            out_shape=out_shape,
            grid=grid,
            in_specs=in_specs,
            out_specs=pl.BlockSpec((tm, lk_pad), o_im),
            scratch_shapes=scratch,
            compiler_params=compiler_params,
        )(*args)

    try:
        attn = _call(True)
    except Exception:
        # pl.Buffered(1) single-buffering unavailable on this jax version;
        # retry with default double buffering (the plan keeps headroom for it).
        attn = _call(False)

    return attn[:lq_eff, :lk]


def _reference(q, k, temperature, mask=None):
    s = (q.astype(jnp.float32) @ k.astype(jnp.float32).T) / temperature
    if mask is not None:
        s = jnp.where(mask > 0, s, jnp.finfo(jnp.float32).min)
    return jax.nn.softmax(s, axis=-1)


if __name__ == "__main__":
    key = jax.random.PRNGKey(0)
    k1, k2, k3, k4, k5, k6 = jax.random.split(key, 6)

    Lq, Lk, D = 8, 8, 32          # seq=8, hidden=32
    temperature = math.sqrt(D)

    q = jax.random.normal(k1, (Lq, D), dtype=jnp.float32)
    kk = jax.random.normal(k2, (Lk, D), dtype=jnp.float32)
    mask = (jax.random.uniform(k3, (Lq, Lk)) > 0.3).astype(jnp.float32)

    # unmasked path
    attn = jax.block_until_ready(scaled_dot_product(q, kk, temperature))
    assert jnp.allclose(attn, _reference(q, kk, temperature),
                        atol=1e-5, rtol=1e-5)

    # masked path (memory_efficient masked_softmax)
    attn_m = jax.block_until_ready(
        scaled_dot_product(q, kk, temperature, mask=mask))
    assert jnp.allclose(attn_m, _reference(q, kk, temperature, mask=mask),
                        atol=1e-5, rtol=1e-5)

    # repeat path (attn.repeat(q_len, 1)), q_len=2: output tiled, not q
    attn_r = jax.block_until_ready(
        scaled_dot_product(q, kk, temperature, repeat=True, q_len=2))
    assert jnp.allclose(attn_r, jnp.tile(_reference(q, kk, temperature), (2, 1)),
                        atol=1e-5, rtol=1e-5)

    # repeat + mask path: q stays resident, grid iterates the repeats
    mask_r = jnp.tile(mask, (2, 1))
    attn_rm = jax.block_until_ready(
        scaled_dot_product(q, kk, temperature, mask=mask_r, repeat=True, q_len=2))
    assert jnp.allclose(
        attn_rm, _reference(jnp.tile(q, (2, 1)), kk, temperature, mask=mask_r),
        atol=1e-5, rtol=1e-5)

    # online-softmax (key-tiled) path, forced via a small block plan
    Lq2, Lk2 = 16, 200
    q2 = jax.random.normal(k4, (Lq2, D), dtype=jnp.float32)
    k2a = jax.random.normal(k5, (Lk2, D), dtype=jnp.float32)
    mask2 = (jax.random.uniform(k6, (Lq2, Lk2)) > 0.3).astype(jnp.float32)

    attn_o = jax.block_until_ready(
        scaled_dot_product(q2, k2a, temperature, block_plan=(8, 128)))
    assert jnp.allclose(attn_o, _reference(q2, k2a, temperature),
                        atol=1e-5, rtol=1e-5)

    attn_om = jax.block_until_ready(
        scaled_dot_product(q2, k2a, temperature, mask=mask2, block_plan=(8, 128)))
    assert jnp.allclose(attn_om, _reference(q2, k2a, temperature, mask=mask2),
                        atol=1e-5, rtol=1e-5)

    # optional bf16-MXU fast path (softmax absorbs most of the operand error)
    attn_b = jax.block_until_ready(
        scaled_dot_product(q, kk, temperature, mask=mask, mxu_bf16=True))
    assert jnp.allclose(attn_b, _reference(q, kk, temperature, mask=mask),
                        atol=3e-2, rtol=0)

    print("KERNEL_OK")
</pallas_src>

<mosaic_0001>
module attributes {stable_mosaic.version = 11 : i64} {
  func.func @_sdp_single_kernel(%arg0: i32, %arg1: memref<8x32xf32, #tpu.memory_space<vmem>>, %arg2: memref<128x32xf32, #tpu.memory_space<vmem>>, %arg3: memref<8x128xf32, #tpu.memory_space<vmem>>) attributes {dimension_semantics = [#tpu.dimension_semantics<parallel>], iteration_bounds = array<i64: 1>, scalar_prefetch = 0 : i64, scratch_operands = 0 : i64, tpu.core_type = #tpu.core_type<tc>, window_params = [{transform_indices = @transform_0, window_bounds = array<i64: 8, 32>}, {pipeline_mode = #tpu.pipeline_mode<synchronous>, transform_indices = @transform_1, window_bounds = array<i64: 128, 32>}, {transform_indices = @transform_2, window_bounds = array<i64: 8, 128>}]} {
    %c0 = arith.constant 0 : index
    %c0_0 = arith.constant 0 : index
    %0 = vector.load %arg1[%c0, %c0_0] : memref<8x32xf32, #tpu.memory_space<vmem>>, vector<8x32xf32>
    %cst = arith.constant 0.176776692 : f32
    %1 = vector.broadcast %cst : f32 to vector<8x32xf32>
    %2 = arith.mulf %0, %1 : vector<8x32xf32>
    %c0_1 = arith.constant 0 : index
    %c0_2 = arith.constant 0 : index
    %3 = vector.load %arg2[%c0_1, %c0_2] : memref<128x32xf32, #tpu.memory_space<vmem>>, vector<128x32xf32>
    %cst_3 = arith.constant dense<0.000000e+00> : vector<8x128xf32>
    %4 = tpu.matmul %2, %3, %cst_3 {dimension_numbers = #tpu.dot_dimension_numbers<[1], [1], [0], [0], [0, 0, 1, 0], [], []>} : vector<8x32xf32>, vector<128x32xf32>, vector<8x128xf32> -> vector<8x128xf32>
    %5 = tpu.iota {dimensions = array<i32: 1>} : vector<8x128xi32>
    %c8_i32 = arith.constant 8 : i32
    %6 = vector.broadcast %c8_i32 : i32 to vector<8x128xi32>
    %7 = arith.cmpi slt, %5, %6 : vector<8x128xi32>
    %cst_4 = arith.constant 0xFF800000 : f32
    %8 = vector.broadcast %cst_4 : f32 to vector<8x128xf32>
    %9 = arith.select %7, %4, %8 : vector<8x128xi1>, vector<8x128xf32>
    %cst_5 = arith.constant dense<0xFF800000> : vector<8xf32>
    %10 = vector.multi_reduction <maximumf>, %9, %cst_5 [1] : vector<8x128xf32> to vector<8xf32>
    %11 = vector.shape_cast %10 : vector<8xf32> to vector<8x1xf32>
    %12 = vector.broadcast %11 : vector<8x1xf32> to vector<8x128xf32>
    %13 = arith.subf %9, %12 : vector<8x128xf32>
    %14 = math.exp %13 : vector<8x128xf32>
    %cst_6 = arith.constant dense<0.000000e+00> : vector<8xf32>
    %15 = vector.multi_reduction <add>, %14, %cst_6 [1] : vector<8x128xf32> to vector<8xf32>
    %16 = vector.shape_cast %15 : vector<8xf32> to vector<8x1xf32>
    %17 = tpu.reciprocal %16 : vector<8x1xf32> -> vector<8x1xf32>
    %18 = vector.broadcast %17 : vector<8x1xf32> to vector<8x128xf32>
    %19 = arith.mulf %14, %18 : vector<8x128xf32>
    %c0_7 = arith.constant 0 : index
    %c0_8 = arith.constant 0 : index
    %20 = vector.load %arg3[%c0_7, %c0_8] : memref<8x128xf32, #tpu.memory_space<vmem>>, vector<8x128xf32>
    tpu.vector_store %arg3[%c0_7, %c0_8], %19 {strides = array<i32>} : memref<8x128xf32, #tpu.memory_space<vmem>>, vector<8x128xf32>,
    return
  }
  func.func @transform_0(%arg0: i32) -> (i32, i32) {
    %c0_i32 = arith.constant 0 : i32
    %c0_i32_0 = arith.constant 0 : i32
    return %arg0, %c0_i32 : i32, i32
  }
  func.func @transform_1(%arg0: i32) -> (i32, i32) {
    %c0_i32 = arith.constant 0 : i32
    %c0_i32_0 = arith.constant 0 : i32
    %c0_i32_1 = arith.constant 0 : i32
    return %c0_i32, %c0_i32_0 : i32, i32
  }
  func.func @transform_2(%arg0: i32) -> (i32, i32) {
    %c0_i32 = arith.constant 0 : i32
    %c0_i32_0 = arith.constant 0 : i32
    return %arg0, %c0_i32 : i32, i32
  }
}

module attributes {stable_mosaic.version = 11 : i64} {
  func.func @_sdp_single_kernel(%arg0: i32, %arg1: memref<8x32xf32, #tpu.memory_space<vmem>>, %arg2: memref<128x32xf32, #tpu.memory_space<vmem>>, %arg3: memref<8x128xf32, #tpu.memory_space<vmem>>) attributes {dimension_semantics = [#tpu.dimension_semantics<parallel>], iteration_bounds = array<i64: 1>, scalar_prefetch = 0 : i64, scratch_operands = 0 : i64, tpu.core_type = #tpu.core_type<tc>, window_params = [{transform_indices = @transform_0, window_bounds = array<i64: 8, 32>}, {pipeline_mode = #tpu.pipeline_mode<synchronous>, transform_indices = @transform_1, window_bounds = array<i64: 128, 32>}, {transform_indices = @transform_2, window_bounds = array<i64: 8, 128>}]} {
    %c0 = arith.constant 0 : index
    %c0_0 = arith.constant 0 : index
    %0 = vector.load %arg1[%c0, %c0_0] : memref<8x32xf32, #tpu.memory_space<vmem>>, vector<8x32xf32>
    %cst = arith.constant 0.176776692 : f32
    %1 = vector.broadcast %cst : f32 to vector<8x32xf32>
    %2 = arith.mulf %0, %1 : vector<8x32xf32>
    %c0_1 = arith.constant 0 : index
    %c0_2 = arith.constant 0 : index
    %3 = vector.load %arg2[%c0_1, %c0_2] : memref<128x32xf32, #tpu.memory_space<vmem>>, vector<128x32xf32>
    %cst_3 = arith.constant dense<0.000000e+00> : vector<8x128xf32>
    %4 = tpu.matmul %2, %3, %cst_3 {dimension_numbers = #tpu.dot_dimension_numbers<[1], [1], [0], [0], [0, 0, 1, 0], [], []>} : vector<8x32xf32>, vector<128x32xf32>, vector<8x128xf32> -> vector<8x128xf32>
    %5 = tpu.iota {dimensions = array<i32: 1>} : vector<8x128xi32>
    %c8_i32 = arith.constant 8 : i32
    %6 = vector.broadcast %c8_i32 : i32 to vector<8x128xi32>
    %7 = arith.cmpi slt, %5, %6 : vector<8x128xi32>
    %cst_4 = arith.constant 0xFF800000 : f32
    %8 = vector.broadcast %cst_4 : f32 to vector<8x128xf32>
    %9 = arith.select %7, %4, %8 : vector<8x128xi1>, vector<8x128xf32>
    %cst_5 = arith.constant dense<0xFF800000> : vector<8xf32>
    %10 = vector.multi_reduction <maximumf>, %9, %cst_5 [1] : vector<8x128xf32> to vector<8xf32>
    %11 = vector.shape_cast %10 : vector<8xf32> to vector<8x1xf32>
    %12 = vector.broadcast %11 : vector<8x1xf32> to vector<8x128xf32>
    %13 = arith.subf %9, %12 : vector<8x128xf32>
    %14 = math.exp %13 : vector<8x128xf32>
    %cst_6 = arith.constant dense<0.000000e+00> : vector<8xf32>
    %15 = vector.multi_reduction <add>, %14, %cst_6 [1] : vector<8x128xf32> to vector<8xf32>
    %16 = vector.shape_cast %15 : vector<8xf32> to vector<8x1xf32>
    %17 = tpu.reciprocal %16 : vector<8x1xf32> -> vector<8x1xf32>
    %18 = vector.broadcast %17 : vector<8x1xf32> to vector<8x128xf32>
    %19 = arith.mulf %14, %18 : vector<8x128xf32>
    %c0_7 = arith.constant 0 : index
    %c0_8 = arith.constant 0 : index
    %20 = vector.load %arg3[%c0_7, %c0_8] : memref<8x128xf32, #tpu.memory_space<vmem>>, vector<8x128xf32>
    tpu.vector_store %arg3[%c0_7, %c0_8], %19 {strides = array<i32>} : memref<8x128xf32, #tpu.memory_space<vmem>>, vector<8x128xf32>,
    return
  }
  func.func @transform_0(%arg0: i32) -> (i32, i32) {
    %c0_i32 = arith.constant 0 : i32
    %c0_i32_0 = arith.constant 0 : i32
    return %arg0, %c0_i32 : i32, i32
  }
  func.func @transform_1(%arg0: i32) -> (i32, i32) {
    %c0_i32 = arith.constant 0 : i32
    %c0_i32_0 = arith.constant 0 : i32
    %c0_i32_1 = arith.constant 0 : i32
    return %c0_i32, %c0_i32_0 : i32, i32
  }
  func.func @transform_2(%arg0: i32) -> (i32, i32) {
    %c0_i32 = arith.constant 0 : i32
    %c0_i32_0 = arith.constant 0 : i32
    return %arg0, %c0_i32 : i32, i32
  }
}

</mosaic_0001>

<bundles_post_ra>
// kernel: tpu_custom_call.1
= control target key start
LH: loop header
LB: loop body
LE: loop exit
PB: predicated region body
PF: predicated region fallthrough
CT: control target
= control target key end

     0   :  { %vm30_vm0 = vcmask 261120   ;;  %v278_v1 = vmov 0.0   ;;  %vm279_vm1 = vmmov 0   ;;  %s367_s0 = inlined_call_operand.vmem [shape: f32[8,32], index: 0, kind: input, shape index: {}]   ;;  %s368_s1 = inlined_call_operand.vmem [shape: f32[128,32], index: 1, kind: input, shape index: {}]   ;;  %s369_s2 = inlined_call_operand.hbm [shape: f32[8,128], index: 2, kind: output, shape index: {}]  }
   0x1   :  { %v29_v0 = vld [vmem:[%s368_s1 + $0x78] sm:$0xff]  ;;  %214 = vmatprep.subr.mxu0 %v278_v1  ;;  %246 = vmatprep.mubr.msk.f32.mxu0 %vm279_vm1, %v278_v1  ;;  %v28_v2 = vld [vmem:[%s368_s1 + $0x70] sm:$0xff] }
   0x2   :  { %215 = vmatpush3.xpose.msk.msra.mxu0 %vm30_vm0, %v29_v0 }
   0x3   :  { %216 = vmatprep.subr.mxu0 %v278_v1 }
   0x4   :  { %7 = vsyncpa [#allocation3], 0  ;;  %v27_v3 = vld [vmem:[%s368_s1 + $0x68] sm:$0xff]  ;;  %v26_v4 = vld [vmem:[%s368_s1 + $0x60] sm:$0xff]  ;;  %v152_v19 = vlaneseq }
   0x5   :  { %v25_v5 = vld [vmem:[%s368_s1 + $0x58] sm:$0xff]  ;;  %v24_v6 = vld [vmem:[%s368_s1 + $0x50] sm:$0xff]  ;;  %v23_v7 = vld [vmem:[%s368_s1 + $0x48] sm:$0xff] }
   0x6   :  { %217 = vmatpush3.xpose.msk.msra.mxu0 %vm30_vm0, %v28_v2  ;;  %v22_v8 = vld [vmem:[%s368_s1 + $0x40] sm:$0xff]  ;;  %v21_v9 = vld [vmem:[%s368_s1 + $0x38] sm:$0xff]  ;;  %v20_v10 = vld [vmem:[%s368_s1 + $0x30] sm:$0xff]  ;;  %v153_v20 = vand.u32 127, %v152_v19 }
   0x7   :  { %218 = vmatprep.subr.mxu0 %v278_v1  ;;  %v19_v11 = vld [vmem:[%s368_s1 + $0x28] sm:$0xff]  ;;  %v18_v12 = vld [vmem:[%s368_s1 + $0x20] sm:$0xff]  ;;  %v17_v13 = vld [vmem:[%s368_s1 + $0x18] sm:$0xff] }
   0x8   :  { %v16_v14 = vld [vmem:[%s368_s1 + $0x10] sm:$0xff]  ;;  %v15_v15 = vld [vmem:[%s368_s1 + $0x8] sm:$0xff]  ;;  %v12_v16 = vld [vmem:[%s367_s0] sm:$0xff]  ;;  %vm154_vm2 = vcmp.lt.s32.totalorder %v153_v20, 8  ;;  %s280_s0 = smov [#allocation2]  }
   0x9   :  { %v14_v17 = vld [vmem:[%s368_s1] sm:$0xff]  ;;  %v13_v18 = vmul.f32 0.17677669, %v12_v16  ;;  %s172_s1 = sshll.u32 %s280_s0, 4  ;;  %s173_s1 = int_to_ptr.vmem [resolvable:$true] %s172_s1 }
   0xa   :  { %219 = vmatpush3.xpose.msk.msra.mxu0 %vm30_vm0, %v27_v3  ;;  %s256_s15 = scalar_lea.vmem %s173_s1, 128  ;;  %p261_p1 = scmp.lt.s32.totalorder %s173_s1, %s173_s1 }
   0xb   :  { %220 = vmatprep.subr.mxu0 %v278_v1  ;;  %p257_p0 = scmp.ne.s32.totalorder %s173_s1, %s256_s15  ;;  %p262_p2 = scmp.lt.s32.totalorder %s256_s15, %s256_s15 }
   0xd   :  { %p263_p3 = por %p262_p2, %p261_p1 }
   0xe   :  { %221 = vmatpush3.xpose.msk.msra.mxu0 %vm30_vm0, %v26_v4 }
   0xf   :  { %222 = vmatprep.subr.mxu0 %v278_v1  ;;  %p264_p4 = pnand %p263_p3, %p257_p0 }
  0x12   :  { %223 = vmatpush3.xpose.msk.msra.mxu0 %vm30_vm0, %v25_v5 }
  0x13   :  { %224 = vmatprep.subr.mxu0 %v278_v1 }
  0x16   :  { %225 = vmatpush3.xpose.msk.msra.mxu0 %vm30_vm0, %v24_v6 }
  0x17   :  { %226 = vmatprep.subr.mxu0 %v278_v1 }
  0x1a   :  { %227 = vmatpush3.xpose.msk.msra.mxu0 %vm30_vm0, %v23_v7 }
  0x1b   :  { %228 = vmatprep.subr.mxu0 %v278_v1 }
  0x1e   :  { %229 = vmatpush3.xpose.msk.msra.mxu0 %vm30_vm0, %v22_v8 }
  0x1f   :  { %230 = vmatprep.subr.mxu0 %v278_v1 }
  0x22   :  { %231 = vmatpush3.xpose.msk.msra.mxu0 %vm30_vm0, %v21_v9 }
  0x23   :  { %232 = vmatprep.subr.mxu0 %v278_v1 }
  0x26   :  { %233 = vmatpush3.xpose.msk.msra.mxu0 %vm30_vm0, %v20_v10 }
  0x27   :  { %234 = vmatprep.subr.mxu0 %v278_v1 }
  0x2a   :  { %235 = vmatpush3.xpose.msk.msra.mxu0 %vm30_vm0, %v19_v11 }
  0x2b   :  { %236 = vmatprep.subr.mxu0 %v278_v1 }
  0x2e   :  { %237 = vmatpush3.xpose.msk.msra.mxu0 %vm30_vm0, %v18_v12 }
  0x2f   :  { %238 = vmatprep.subr.mxu0 %v278_v1 }
  0x32   :  { %239 = vmatpush3.xpose.msk.msra.mxu0 %vm30_vm0, %v17_v13 }
  0x33   :  { %240 = vmatprep.subr.mxu0 %v278_v1 }
  0x36   :  { %241 = vmatpush3.xpose.msk.msra.mxu0 %vm30_vm0, %v16_v14 }
  0x37   :  { %242 = vmatprep.subr.mxu0 %v278_v1 }
  0x3a   :  { %243 = vmatpush3.xpose.msk.msra.mxu0 %vm30_vm0, %v15_v15 }
  0x3b   :  { %244 = vmatprep.subr.mxu0 %v278_v1 }
  0x3e   :  { %245 = vmatpush3.xpose.msk.msra.mxu0 %vm30_vm0, %v14_v17 }
  0x41   :  { %247 = vmatmul.mubr.msk.f32.vlgmr.msra.gmra.mxu0 %vm30_vm0, %v13_v18 }
 0x101   :  { %v148_v21 = vpop.f32.mrf.mxu0 }
 0x102   :  { %v155_v22 = vsel %vm154_vm2, %v148_v21, -inf }
 0x103   :  { %156 = vmax.xlane.f32.xlu0 %v155_v22  ;;  %v248_v23 = vpop.f32.mrf.mxu0 }
 0x18c   :  { %v157_v24 = vpop.xlane.xlu0 %156 }
 0x18d   :  { %v158_v25 = vsub.f32 %v155_v22, %v157_v24 }
 0x18f   :  { %v159_v26 = vmul.f32 1.442695, %v158_v25 }
 0x191   :  { %252 = vpow2.f32 %v159_v26 }
 0x19e   :  { %v253_v27 = vpop.eup %252 }
 0x19f   :  { %161 = vadd.xlane.f32.xlu0 %v253_v27 }
 0x228   :  { %v162_v28 = vpop.xlane.xlu0 %161 }
 0x229   :  { %254 = vrcp.f32 %v162_v28 }
 0x236   :  { %v255_v29 = vpop.eup %254 }
 0x237   :  { %v164_v30 = vmul.f32 %v255_v29, %v253_v27 }
 0x239   :  { %165 = vst [vmem:[#allocation2] sm:$0xff] %v164_v30 }
 0x23a   :  { %267 = shalt.err (!%p264_p4)
}
 0x23b   :  { %175 = dma.vmem_to_hbm [thread:$0]  %s173_s1, 128, %s369_s2, [#allocation3]  }
 0x23c   :  { %276 = dma.done.wait [#allocation3], 128  }
 0x23d   :  { %277 = vsyncadd [#allocation3], 4294967168 }
 0x23e   :  { %179 = vsyncpa [#allocation3], 1 }

// kernel: tpu_custom_call.1
= control target key start
LH: loop header
LB: loop body
LE: loop exit
PB: predicated region body
PF: predicated region fallthrough
CT: control target
= control target key end

     0   :  { %vm30_vm0 = vcmask 261120   ;;  %v278_v1 = vmov 0.0   ;;  %vm279_vm1 = vmmov 0   ;;  %s367_s0 = inlined_call_operand.vmem [shape: f32[8,32], index: 0, kind: input, shape index: {}]   ;;  %s368_s1 = inlined_call_operand.vmem [shape: f32[128,32], index: 1, kind: input, shape index: {}]   ;;  %s369_s2 = inlined_call_operand.hbm [shape: f32[8,128], index: 2, kind: output, shape index: {}]  }
   0x1   :  { %v29_v0 = vld [vmem:[%s368_s1 + $0x78] sm:$0xff]  ;;  %214 = vmatprep.subr.mxu0 %v278_v1  ;;  %246 = vmatprep.mubr.msk.f32.mxu0 %vm279_vm1, %v278_v1  ;;  %v28_v2 = vld [vmem:[%s368_s1 + $0x70] sm:$0xff] }
   0x2   :  { %215 = vmatpush3.xpose.msk.msra.mxu0 %vm30_vm0, %v29_v0 }
   0x3   :  { %216 = vmatprep.subr.mxu0 %v278_v1 }
   0x4   :  { %7 = vsyncpa [#allocation3], 0  ;;  %v27_v3 = vld [vmem:[%s368_s1 + $0x68] sm:$0xff]  ;;  %v26_v4 = vld [vmem:[%s368_s1 + $0x60] sm:$0xff]  ;;  %v152_v19 = vlaneseq }
   0x5   :  { %v25_v5 = vld [vmem:[%s368_s1 + $0x58] sm:$0xff]  ;;  %v24_v6 = vld [vmem:[%s368_s1 + $0x50] sm:$0xff]  ;;  %v23_v7 = vld [vmem:[%s368_s1 + $0x48] sm:$0xff] }
   0x6   :  { %217 = vmatpush3.xpose.msk.msra.mxu0 %vm30_vm0, %v28_v2  ;;  %v22_v8 = vld [vmem:[%s368_s1 + $0x40] sm:$0xff]  ;;  %v21_v9 = vld [vmem:[%s368_s1 + $0x38] sm:$0xff]  ;;  %v20_v10 = vld [vmem:[%s368_s1 + $0x30] sm:$0xff]  ;;  %v153_v20 = vand.u32 127, %v152_v19 }
   0x7   :  { %218 = vmatprep.subr.mxu0 %v278_v1  ;;  %v19_v11 = vld [vmem:[%s368_s1 + $0x28] sm:$0xff]  ;;  %v18_v12 = vld [vmem:[%s368_s1 + $0x20] sm:$0xff]  ;;  %v17_v13 = vld [vmem:[%s368_s1 + $0x18] sm:$0xff] }
   0x8   :  { %v16_v14 = vld [vmem:[%s368_s1 + $0x10] sm:$0xff]  ;;  %v15_v15 = vld [vmem:[%s368_s1 + $0x8] sm:$0xff]  ;;  %v12_v16 = vld [vmem:[%s367_s0] sm:$0xff]  ;;  %vm154_vm2 = vcmp.lt.s32.totalorder %v153_v20, 8  ;;  %s280_s0 = smov [#allocation2]  }
   0x9   :  { %v14_v17 = vld [vmem:[%s368_s1] sm:$0xff]  ;;  %v13_v18 = vmul.f32 0.17677669, %v12_v16  ;;  %s172_s1 = sshll.u32 %s280_s0, 4  ;;  %s173_s1 = int_to_ptr.vmem [resolvable:$true] %s172_s1 }
   0xa   :  { %219 = vmatpush3.xpose.msk.msra.mxu0 %vm30_vm0, %v27_v3  ;;  %s256_s15 = scalar_lea.vmem %s173_s1, 128  ;;  %p261_p1 = scmp.lt.s32.totalorder %s173_s1, %s173_s1 }
   0xb   :  { %220 = vmatprep.subr.mxu0 %v278_v1  ;;  %p257_p0 = scmp.ne.s32.totalorder %s173_s1, %s256_s15  ;;  %p262_p2 = scmp.lt.s32.totalorder %s256_s15, %s256_s15 }
   0xd   :  { %p263_p3 = por %p262_p2, %p261_p1 }
   0xe   :  { %221 = vmatpush3.xpose.msk.msra.mxu0 %vm30_vm0, %v26_v4 }
   0xf   :  { %222 = vmatprep.subr.mxu0 %v278_v1  ;;  %p264_p4 = pnand %p263_p3, %p257_p0 }
  0x12   :  { %223 = vmatpush3.xpose.msk.msra.mxu0 %vm30_vm0, %v25_v5 }
  0x13   :  { %224 = vmatprep.subr.mxu0 %v278_v1 }
  0x16   :  { %225 = vmatpush3.xpose.msk.msra.mxu0 %vm30_vm0, %v24_v6 }
  0x17   :  { %226 = vmatprep.subr.mxu0 %v278_v1 }
  0x1a   :  { %227 = vmatpush3.xpose.msk.msra.mxu0 %vm30_vm0, %v23_v7 }
  0x1b   :  { %228 = vmatprep.subr.mxu0 %v278_v1 }
  0x1e   :  { %229 = vmatpush3.xpose.msk.msra.mxu0 %vm30_vm0, %v22_v8 }
  0x1f   :  { %230 = vmatprep.subr.mxu0 %v278_v1 }
  0x22   :  { %231 = vmatpush3.xpose.msk.msra.mxu0 %vm30_vm0, %v21_v9 }
  0x23   :  { %232 = vmatprep.subr.mxu0 %v278_v1 }
  0x26   :  { %233 = vmatpush3.xpose.msk.msra.mxu0 %vm30_vm0, %v20_v10 }
  0x27   :  { %234 = vmatprep.subr.mxu0 %v278_v1 }
  0x2a   :  { %235 = vmatpush3.xpose.msk.msra.mxu0 %vm30_vm0, %v19_v11 }
  0x2b   :  { %236 = vmatprep.subr.mxu0 %v278_v1 }
  0x2e   :  { %237 = vmatpush3.xpose.msk.msra.mxu0 %vm30_vm0, %v18_v12 }
  0x2f   :  { %238 = vmatprep.subr.mxu0 %v278_v1 }
  0x32   :  { %239 = vmatpush3.xpose.msk.msra.mxu0 %vm30_vm0, %v17_v13 }
  0x33   :  { %240 = vmatprep.subr.mxu0 %v278_v1 }
  0x36   :  { %241 = vmatpush3.xpose.msk.msra.mxu0 %vm30_vm0, %v16_v14 }
  0x37   :  { %242 = vmatprep.subr.mxu0 %v278_v1 }
  0x3a   :  { %243 = vmatpush3.xpose.msk.msra.mxu0 %vm30_vm0, %v15_v15 }
  0x3b   :  { %244 = vmatprep.subr.mxu0 %v278_v1 }
  0x3e   :  { %245 = vmatpush3.xpose.msk.msra.mxu0 %vm30_vm0, %v14_v17 }
  0x41   :  { %247 = vmatmul.mubr.msk.f32.vlgmr.msra.gmra.mxu0 %vm30_vm0, %v13_v18 }
 0x101   :  { %v148_v21 = vpop.f32.mrf.mxu0 }
 0x102   :  { %v155_v22 = vsel %vm154_vm2, %v148_v21, -inf }
 0x103   :  { %156 = vmax.xlane.f32.xlu0 %v155_v22  ;;  %v248_v23 = vpop.f32.mrf.mxu0 }
 0x18c   :  { %v157_v24 = vpop.xlane.xlu0 %156 }
 0x18d   :  { %v158_v25 = vsub.f32 %v155_v22, %v157_v24 }
 0x18f   :  { %v159_v26 = vmul.f32 1.442695, %v158_v25 }
 0x191   :  { %252 = vpow2.f32 %v159_v26 }
 0x19e   :  { %v253_v27 = vpop.eup %252 }
 0x19f   :  { %161 = vadd.xlane.f32.xlu0 %v253_v27 }
 0x228   :  { %v162_v28 = vpop.xlane.xlu0 %161 }
 0x229   :  { %254 = vrcp.f32 %v162_v28 }
 0x236   :  { %v255_v29 = vpop.eup %254 }
 0x237   :  { %v164_v30 = vmul.f32 %v255_v29, %v253_v27 }
 0x239   :  { %165 = vst [vmem:[#allocation2] sm:$0xff] %v164_v30 }
 0x23a   :  { %267 = shalt.err (!%p264_p4)
}
 0x23b   :  { %175 = dma.vmem_to_hbm [thread:$0]  %s173_s1, 128, %s369_s2, [#allocation3]  }
 0x23c   :  { %276 = dma.done.wait [#allocation3], 128  }
 0x23d   :  { %277 = vsyncadd [#allocation3], 4294967168 }
 0x23e   :  { %179 = vsyncpa [#allocation3], 1 }

</bundles_post_ra>
